<compile_context>
chip_gen: v7x
topology: tpu7x:2x2x1
jax: 0.10.0
libtpu: 0.0.40
codegen_flags: <defaults>
</compile_context>

<pallas_src>
import math
import functools

import jax
import jax.numpy as jnp
from jax.experimental import pallas as pl
from jax.experimental.pallas import tpu as pltpu


def _hyper_ca_fused_kernel(x_ref, o_ref, *, inv_scale2, num_layers):
    # One graph per grid step; block is [1, N, D], squeeze the leading 1.
    x = x_ref[0].astype(jnp.float32)                   # [N, D], resident in VMEM
    n, d = x.shape

    # Hoisted once (not per layer): sign mask that negates the Lorentz time
    # component (feature index 0) of the matmul lhs, with the softmax scale
    # 2/sqrt(hidden) folded in as a compile-time constant, so the QK matmul
    # directly produces the (shift-invariant) softmax logits.
    col = jax.lax.broadcasted_iota(jnp.int32, (n, d), 1)
    sign = jnp.where(col == 0, -inv_scale2, inv_scale2).astype(jnp.float32)

    def lorentz_normalize(u):
        # denom = sqrt(clamp(|u_t^2 - ||u_s||^2|, 1e-8)); note t - s = 2*t - (t+s).
        uu = u * u
        row = jnp.sum(uu, axis=-1, keepdims=True)       # t + s (one lane reduce, XLU)
        t = uu[:, 0:1]                                  # time^2, no mask/where needed
        denom2 = jnp.maximum(jnp.abs(2.0 * t - row), 1e-8)
        return u * jax.lax.rsqrt(denom2)                # rsqrt -> EUP slot

    # num_layers is a small static constant (2): unrolled Python loop.
    for _ in range(num_layers):
        # logits = (2/scale) * cinner(x, x)  (softmax is shift-invariant so the
        # "+2" and bias=0 drop out).  NT-form dot_general: contract dim 1 of both.
        logits = jax.lax.dot_general(
            x * sign, x,
            dimension_numbers=(((1,), (1,)), ((), ())),
            preferred_element_type=jnp.float32,
        )                                               # [N, N]
        row_max = jnp.max(logits, axis=-1, keepdims=True)
        e = jnp.exp(logits - row_max)                   # unnormalized weights [N, N]
        row_sum = jnp.sum(e, axis=-1, keepdims=True)

        # (e / row_sum) @ x == (e @ x) * (1/row_sum): divide shrinks to [N, D]
        # and becomes an EUP reciprocal.  The approx rcp's per-row scale error
        # cancels exactly inside lorentz_normalize (it rescales u and denom
        # identically), so accuracy is unaffected unless the 1e-8 clamp fires.
        ave = jnp.dot(e, x, preferred_element_type=jnp.float32) \
            * pl.reciprocal(row_sum, approx=True)

        # mid_point(vs, att_weight) followed by mid_point over H=1 heads.
        x = lorentz_normalize(lorentz_normalize(ave))

    o_ref[0] = x.astype(o_ref.dtype)


@functools.partial(jax.jit, static_argnames=("hidden_channels", "num_layers"))
def hyper_ca_forward(x, *, hidden_channels, num_layers=2):
    """x: [N, D] single graph or [B, N, D] batch of graphs."""
    squeeze = x.ndim == 2
    if squeeze:
        x = x[None]
    b, n, d = x.shape

    # Compile-time constants (hyperCALayer.__init__: scale=sqrt(out_channels), bias=0).
    inv_scale2 = 2.0 / math.sqrt(hidden_channels)

    # VMEM budget guard for the monolithic (un-tiled) fused path: roughly two
    # NxN f32 slabs (logits + e) plus a few NxD buffers per graph.  Keep it
    # well under the most restrictive scoped-VMEM default (16 MiB on v5e).
    est_bytes = 4 * (2 * n * n + 6 * n * d)
    assert est_bytes < (12 << 20), (
        "hyper_ca_forward: fused single-block path would exceed scoped VMEM; "
        "TODO(synk): use the flash-style per-layer tiled path for large N."
    )

    kernel = functools.partial(
        _hyper_ca_fused_kernel, inv_scale2=inv_scale2, num_layers=num_layers
    )
    out = pl.pallas_call(
        kernel,
        out_shape=jax.ShapeDtypeStruct((b, n, d), x.dtype),
        grid=(b,),
        in_specs=[pl.BlockSpec((1, n, d), lambda i: (i, 0, 0))],
        out_specs=pl.BlockSpec((1, n, d), lambda i: (i, 0, 0)),
        compiler_params=pltpu.CompilerParams(
            dimension_semantics=("parallel",),   # batch axis -> megacore on v7x
        ),
    )(x)
    return out[0] if squeeze else out


def hyper_ca_forward_ref(x, *, hidden_channels, num_layers=2):
    """Pure-JAX reference mirroring the PyTorch forward (num_heads=1)."""
    scale = math.sqrt(hidden_channels)

    def lorentz_normalize(u):
        t = u[..., 0:1] ** 2
        s = jnp.sum(u[..., 1:] ** 2, axis=-1, keepdims=True)
        denom = jnp.sqrt(jnp.maximum(jnp.abs(t - s), 1e-8))
        return u / denom

    for _ in range(num_layers):
        xq = x.at[..., 0:1].multiply(-1.0)
        a = jnp.einsum("...id,...jd->...ij", xq, x)
        w = jax.nn.softmax((2.0 + 2.0 * a) / scale, axis=-1)
        ave = jnp.einsum("...ij,...jd->...id", w, x)
        x = lorentz_normalize(lorentz_normalize(ave))
    return x


if __name__ == "__main__":
    B, N, HIDDEN = 4, 16, 32        # 4 graphs, 16 nodes, hidden_channels = 32
    key = jax.random.PRNGKey(0)
    x = jax.random.normal(key, (B, N, HIDDEN), dtype=jnp.float32)

    # Batched path (parallel grid axis over graphs).
    out = hyper_ca_forward(x, hidden_channels=HIDDEN, num_layers=2)
    out = jax.block_until_ready(out)
    ref = hyper_ca_forward_ref(x, hidden_channels=HIDDEN, num_layers=2)
    assert out.shape == (B, N, HIDDEN)
    assert jnp.allclose(out, ref, atol=1e-4, rtol=1e-4), "batched mismatch vs reference"

    # Single-graph path (matches the PyTorch forward signature exactly).
    out1 = hyper_ca_forward(x[0], hidden_channels=HIDDEN, num_layers=2)
    out1 = jax.block_until_ready(out1)
    ref1 = hyper_ca_forward_ref(x[0], hidden_channels=HIDDEN, num_layers=2)
    assert out1.shape == (N, HIDDEN)
    assert jnp.allclose(out1, ref1, atol=1e-4, rtol=1e-4), "single-graph mismatch vs reference"

    print("KERNEL_OK")
</pallas_src>

<mosaic_0001>
module attributes {stable_mosaic.version = 11 : i64} {
  func.func @_hyper_ca_fused_kernel(%arg0: i32, %arg1: memref<1x16x32xf32, #tpu.memory_space<vmem>>, %arg2: memref<1x16x32xf32, #tpu.memory_space<vmem>>) attributes {dimension_semantics = [#tpu.dimension_semantics<parallel>], iteration_bounds = array<i64: 4>, scalar_prefetch = 0 : i64, scratch_operands = 0 : i64, tpu.core_type = #tpu.core_type<tc>, window_params = [{transform_indices = @transform_0, window_bounds = array<i64: 1, 16, 32>}, {transform_indices = @transform_1, window_bounds = array<i64: 1, 16, 32>}]} {
    %c0 = arith.constant 0 : index
    %c0_0 = arith.constant 0 : index
    %c0_1 = arith.constant 0 : index
    %0 = vector.load %arg1[%c0, %c0_0, %c0_1] : memref<1x16x32xf32, #tpu.memory_space<vmem>>, vector<1x16x32xf32>
    %1 = vector.shape_cast %0 : vector<1x16x32xf32> to vector<16x32xf32>
    %2 = tpu.iota {dimensions = array<i32: 1>} : vector<16x32xi32>
    %c0_i32 = arith.constant 0 : i32
    %3 = vector.broadcast %c0_i32 : i32 to vector<16x32xi32>
    %4 = arith.cmpi eq, %2, %3 : vector<16x32xi32>
    %cst = arith.constant -0.353553385 : f32
    %cst_2 = arith.constant 0.353553385 : f32
    %5 = vector.broadcast %cst : f32 to vector<16x32xf32>
    %6 = vector.broadcast %cst_2 : f32 to vector<16x32xf32>
    %7 = arith.select %4, %5, %6 : vector<16x32xi1>, vector<16x32xf32>
    %8 = arith.mulf %1, %7 : vector<16x32xf32>
    %cst_3 = arith.constant dense<0.000000e+00> : vector<16x16xf32>
    %9 = tpu.matmul %8, %1, %cst_3 {dimension_numbers = #tpu.dot_dimension_numbers<[1], [1], [0], [0], [0, 0, 1, 0], [], []>} : vector<16x32xf32>, vector<16x32xf32>, vector<16x16xf32> -> vector<16x16xf32>
    %cst_4 = arith.constant dense<0xFF800000> : vector<16xf32>
    %10 = vector.multi_reduction <maximumf>, %9, %cst_4 [1] : vector<16x16xf32> to vector<16xf32>
    %11 = vector.shape_cast %10 : vector<16xf32> to vector<16x1xf32>
    %12 = vector.broadcast %11 : vector<16x1xf32> to vector<16x16xf32>
    %13 = arith.subf %9, %12 : vector<16x16xf32>
    %14 = math.exp %13 : vector<16x16xf32>
    %cst_5 = arith.constant dense<0.000000e+00> : vector<16xf32>
    %15 = vector.multi_reduction <add>, %14, %cst_5 [1] : vector<16x16xf32> to vector<16xf32>
    %16 = vector.shape_cast %15 : vector<16xf32> to vector<16x1xf32>
    %cst_6 = arith.constant dense<0.000000e+00> : vector<16x32xf32>
    %17 = tpu.matmul %14, %1, %cst_6 {dimension_numbers = #tpu.dot_dimension_numbers<[1], [0], [0], [1], [0, 0, 1, 1], [], []>} : vector<16x16xf32>, vector<16x32xf32>, vector<16x32xf32> -> vector<16x32xf32>
    %18 = tpu.reciprocal %16 {approx = true} : vector<16x1xf32> -> vector<16x1xf32>
    %19 = vector.broadcast %18 : vector<16x1xf32> to vector<16x32xf32>
    %20 = arith.mulf %17, %19 : vector<16x32xf32>
    %21 = arith.mulf %20, %20 : vector<16x32xf32>
    %cst_7 = arith.constant dense<0.000000e+00> : vector<16xf32>
    %22 = vector.multi_reduction <add>, %21, %cst_7 [1] : vector<16x32xf32> to vector<16xf32>
    %23 = vector.shape_cast %22 : vector<16xf32> to vector<16x1xf32>
    %24 = vector.extract_strided_slice %21 {offsets = [0, 0], sizes = [16, 1], strides = [1, 1]} : vector<16x32xf32> to vector<16x1xf32>
    %cst_8 = arith.constant 2.000000e+00 : f32
    %25 = vector.broadcast %cst_8 : f32 to vector<16x1xf32>
    %26 = arith.mulf %25, %24 : vector<16x1xf32>
    %27 = arith.subf %26, %23 : vector<16x1xf32>
    %28 = math.absf %27 : vector<16x1xf32>
    %cst_9 = arith.constant 9.99999993E-9 : f32
    %29 = vector.broadcast %cst_9 : f32 to vector<16x1xf32>
    %30 = arith.maximumf %28, %29 : vector<16x1xf32>
    %31 = math.rsqrt %30 : vector<16x1xf32>
    %32 = vector.broadcast %31 : vector<16x1xf32> to vector<16x32xf32>
    %33 = arith.mulf %20, %32 : vector<16x32xf32>
    %34 = arith.mulf %33, %33 : vector<16x32xf32>
    %cst_10 = arith.constant dense<0.000000e+00> : vector<16xf32>
    %35 = vector.multi_reduction <add>, %34, %cst_10 [1] : vector<16x32xf32> to vector<16xf32>
    %36 = vector.shape_cast %35 : vector<16xf32> to vector<16x1xf32>
    %37 = vector.extract_strided_slice %34 {offsets = [0, 0], sizes = [16, 1], strides = [1, 1]} : vector<16x32xf32> to vector<16x1xf32>
    %cst_11 = arith.constant 2.000000e+00 : f32
    %38 = vector.broadcast %cst_11 : f32 to vector<16x1xf32>
    %39 = arith.mulf %38, %37 : vector<16x1xf32>
    %40 = arith.subf %39, %36 : vector<16x1xf32>
    %41 = math.absf %40 : vector<16x1xf32>
    %cst_12 = arith.constant 9.99999993E-9 : f32
    %42 = vector.broadcast %cst_12 : f32 to vector<16x1xf32>
    %43 = arith.maximumf %41, %42 : vector<16x1xf32>
    %44 = math.rsqrt %43 : vector<16x1xf32>
    %45 = vector.broadcast %44 : vector<16x1xf32> to vector<16x32xf32>
    %46 = arith.mulf %33, %45 : vector<16x32xf32>
    %47 = arith.mulf %46, %7 : vector<16x32xf32>
    %cst_13 = arith.constant dense<0.000000e+00> : vector<16x16xf32>
    %48 = tpu.matmul %47, %46, %cst_13 {dimension_numbers = #tpu.dot_dimension_numbers<[1], [1], [0], [0], [0, 0, 1, 0], [], []>} : vector<16x32xf32>, vector<16x32xf32>, vector<16x16xf32> -> vector<16x16xf32>
    %cst_14 = arith.constant dense<0xFF800000> : vector<16xf32>
    %49 = vector.multi_reduction <maximumf>, %48, %cst_14 [1] : vector<16x16xf32> to vector<16xf32>
    %50 = vector.shape_cast %49 : vector<16xf32> to vector<16x1xf32>
    %51 = vector.broadcast %50 : vector<16x1xf32> to vector<16x16xf32>
    %52 = arith.subf %48, %51 : vector<16x16xf32>
    %53 = math.exp %52 : vector<16x16xf32>
    %cst_15 = arith.constant dense<0.000000e+00> : vector<16xf32>
    %54 = vector.multi_reduction <add>, %53, %cst_15 [1] : vector<16x16xf32> to vector<16xf32>
    %55 = vector.shape_cast %54 : vector<16xf32> to vector<16x1xf32>
    %cst_16 = arith.constant dense<0.000000e+00> : vector<16x32xf32>
    %56 = tpu.matmul %53, %46, %cst_16 {dimension_numbers = #tpu.dot_dimension_numbers<[1], [0], [0], [1], [0, 0, 1, 1], [], []>} : vector<16x16xf32>, vector<16x32xf32>, vector<16x32xf32> -> vector<16x32xf32>
    %57 = tpu.reciprocal %55 {approx = true} : vector<16x1xf32> -> vector<16x1xf32>
    %58 = vector.broadcast %57 : vector<16x1xf32> to vector<16x32xf32>
    %59 = arith.mulf %56, %58 : vector<16x32xf32>
    %60 = arith.mulf %59, %59 : vector<16x32xf32>
    %cst_17 = arith.constant dense<0.000000e+00> : vector<16xf32>
    %61 = vector.multi_reduction <add>, %60, %cst_17 [1] : vector<16x32xf32> to vector<16xf32>
    %62 = vector.shape_cast %61 : vector<16xf32> to vector<16x1xf32>
    %63 = vector.extract_strided_slice %60 {offsets = [0, 0], sizes = [16, 1], strides = [1, 1]} : vector<16x32xf32> to vector<16x1xf32>
    %cst_18 = arith.constant 2.000000e+00 : f32
    %64 = vector.broadcast %cst_18 : f32 to vector<16x1xf32>
    %65 = arith.mulf %64, %63 : vector<16x1xf32>
    %66 = arith.subf %65, %62 : vector<16x1xf32>
    %67 = math.absf %66 : vector<16x1xf32>
    %cst_19 = arith.constant 9.99999993E-9 : f32
    %68 = vector.broadcast %cst_19 : f32 to vector<16x1xf32>
    %69 = arith.maximumf %67, %68 : vector<16x1xf32>
    %70 = math.rsqrt %69 : vector<16x1xf32>
    %71 = vector.broadcast %70 : vector<16x1xf32> to vector<16x32xf32>
    %72 = arith.mulf %59, %71 : vector<16x32xf32>
    %73 = arith.mulf %72, %72 : vector<16x32xf32>
    %cst_20 = arith.constant dense<0.000000e+00> : vector<16xf32>
    %74 = vector.multi_reduction <add>, %73, %cst_20 [1] : vector<16x32xf32> to vector<16xf32>
    %75 = vector.shape_cast %74 : vector<16xf32> to vector<16x1xf32>
    %76 = vector.extract_strided_slice %73 {offsets = [0, 0], sizes = [16, 1], strides = [1, 1]} : vector<16x32xf32> to vector<16x1xf32>
    %cst_21 = arith.constant 2.000000e+00 : f32
    %77 = vector.broadcast %cst_21 : f32 to vector<16x1xf32>
    %78 = arith.mulf %77, %76 : vector<16x1xf32>
    %79 = arith.subf %78, %75 : vector<16x1xf32>
    %80 = math.absf %79 : vector<16x1xf32>
    %cst_22 = arith.constant 9.99999993E-9 : f32
    %81 = vector.broadcast %cst_22 : f32 to vector<16x1xf32>
    %82 = arith.maximumf %80, %81 : vector<16x1xf32>
    %83 = math.rsqrt %82 : vector<16x1xf32>
    %84 = vector.broadcast %83 : vector<16x1xf32> to vector<16x32xf32>
    %85 = arith.mulf %72, %84 : vector<16x32xf32>
    %c0_23 = arith.constant 0 : index
    %c0_24 = arith.constant 0 : index
    %c0_25 = arith.constant 0 : index
    %86 = vector.load %arg2[%c0_23, %c0_24, %c0_25] : memref<1x16x32xf32, #tpu.memory_space<vmem>>, vector<1x16x32xf32>
    %87 = vector.shape_cast %86 : vector<1x16x32xf32> to vector<16x32xf32>
    %88 = vector.shape_cast %85 : vector<16x32xf32> to vector<1x16x32xf32>
    tpu.vector_store %arg2[%c0_23, %c0_24, %c0_25], %88 {strides = array<i32>} : memref<1x16x32xf32, #tpu.memory_space<vmem>>, vector<1x16x32xf32>,
    return
  }
  func.func @transform_0(%arg0: i32) -> (i32, i32, i32) {
    %c0_i32 = arith.constant 0 : i32
    %c0_i32_0 = arith.constant 0 : i32
    %c0_i32_1 = arith.constant 0 : i32
    return %arg0, %c0_i32, %c0_i32_0 : i32, i32, i32
  }
  func.func @transform_1(%arg0: i32) -> (i32, i32, i32) {
    %c0_i32 = arith.constant 0 : i32
    %c0_i32_0 = arith.constant 0 : i32
    %c0_i32_1 = arith.constant 0 : i32
    return %arg0, %c0_i32, %c0_i32_0 : i32, i32, i32
  }
}

</mosaic_0001>

<bundles_post_ra>
// kernel: hyper_ca_forward.1
= control target key start
LH: loop header
LB: loop body
LE: loop exit
PB: predicated region body
PF: predicated region fallthrough
CT: control target
= control target key end

     0   :  { %6 = vsyncpa [#allocation3], 0  ;;  %s1240_s0 = inlined_call_operand.hbm [shape: f32[4,16,32], index: 0, kind: input, shape index: {}]   ;;  %s1241_s1 = inlined_call_operand.hbm [shape: f32[4,16,32], index: 1, kind: output, shape index: {}]  }
   0x1   :  { %8 = vsyncpa [#allocation3 + $0x1], 0 }
   0x2   :  { %9 = vsyncpa [#allocation4], 0 }
   0x3   :  { %11 = vsyncpa [#allocation4 + $0x1], 0  ;;  %s1030_s6 = smov 0   ;;  %s1032_s7 = smov 0  }
   0x4   :  { %s1034_s8 = smov 0   ;;  %s1036_s9 = smov 0  }
   0x5 LB: > { %s1051_s10 = sadd.s32 4294967295, %s1010_s9   ;;  %s736_s11 = sadd.s32 4294967294, %s1010_s9   ;;  %s1010_s9 = sphi %s1036_s9, %s1255_s9   ;;  %s1006_s8 = sphi %s1034_s8, %s1254_s8   ;;  %s1002_s7 = sphi %s1032_s7, %s1253_s7   ;;  %s998_s6 = sphi %s1030_s6, %s1252_s6  }
   0x6   : > { %s1055_s12 = sadd.s32 1, %s1010_s9   ;;  %s24_s13 = sadd.s32 1, %s1006_s8 }
   0x7   : > { %s21_s14 = ssub.s32 %s1010_s9, %s1055_s12  ;;  %p31_p0 = scmp.ne.s32.totalorder %s1006_s8, %s1002_s7 }
   0x8   : > { %p22_p1 = scmp.eq.s32.totalorder %s21_s14, 0  ;;  %p32_p2 = scmp.eq.s32.totalorder %s1010_s9, 0 }
   0x9   : > { %p37_p3 = scmp.ne.s32.totalorder %s1002_s7, %s998_s6  ;;  %p38_p4 = scmp.eq.s32.totalorder %s1051_s10, 0 }
   0xa   : > { %s1067_s15 = scalar_select %p22_p1, %s1006_s8, %s24_s13  }
   0xb   : > { %p1069_p5 = por %p32_p2, %p31_p0  ;;  %p1073_p6 = por %p38_p4, %p37_p3 }
   0xc   : > { %p61_p7 = scmp.eq.s32.totalorder %s1051_s10, 3  ;;  %p67_p8 = scmp.eq.s32.totalorder %s736_s11, 3 }
   0xd   : > { %p840_p9 = scmp.lt.s32.totalorder %s1010_s9, 4  ;;  %s87_s20 = sand.u32 1, %s1006_s8  }
   0xe   : > { %p1079_p10 = por %p61_p7, %p31_p0  ;;  %p1083_p11 = por %p67_p8, %p37_p3 }
   0xf   : > { %s762_s21 = sshll.u32 %s1010_s9, 8  ;;  %s739_s22 = sshll.u32 %s87_s20, 4 }
  0x10   : > { %s1245_s18 = scalar_select %p1079_p10, 1, 0 }
  0x11   : > { %s1246_s19 = scalar_select %p1083_p11, 1, 0 }
  0x12   : > { %s1092_s25 = scalar_lea.hbm %s1240_s0, %s762_s21  ;;  %s91_s26 = scalar_lea.vmem [#allocation2], %s739_s22 }
  0x13   : > { %s98_s27 = sshll.u32 %s91_s26, 4  ;;  %p1096_p12 = pnand %p840_p9, %p1069_p5  ;;  %s1100_s27 = int_to_ptr.vmem [resolvable:$true] %s98_s27 }
  0x14   : > { %s1102_s29 = scalar_lea.sflag [#allocation3], %s87_s20  ;;  %s914_s30 = scalar_lea.hbm %s1092_s25, 256 }
  0x15   : > { %p915_p13 = scmp.ne.s32.totalorder %s1092_s25, %s914_s30  ;;  %p916_p0 = pneg %p1096_p12 }
  0x16   : > { %s919_s4 = scalar_lea.hbm %s1240_s0, 1024  ;;  %p920_p3 = scmp.lt.u32.totalorder %s1092_s25, %s1240_s0 }
  0x17   : > { %p917_p1 = pnand %p916_p0, %p915_p13  ;;  %p921_p4 = scmp.lt.u32.totalorder %s919_s4, %s914_s30 }
  0x18   : > { %p923_p7 = scmp.lt.u32.totalorder %s914_s30, %s1092_s25 }
  0x19   : > { %p918_p2 = pneg %p917_p1  ;;  %p922_p5 = por %p921_p4, %p920_p3 }
  0x1b   : > { %p924_p8 = por %p923_p7, %p922_p5 }
  0x1d   : > { %p925_p9 = pnand %p924_p8, %p918_p2 }
  0x1f   : > { %928 = shalt.err (!%p925_p9)
}
  0x20   : > { %s929_s13 = scalar_lea.vmem %s1100_s27, 256  ;;  %s1012_s14 = smov [#allocation2]  }
  0x21   : > { %p930_p13 = scmp.ne.s32.totalorder %s1100_s27, %s929_s13  ;;  %s934_s16 = sshll.u32 %s1012_s14, 4  ;;  %s935_s16 = int_to_ptr.vmem [resolvable:$false] %s934_s16 }
  0x22   : > { %s936_s20 = scalar_lea.vmem %s935_s16, 512  ;;  %p937_p10 = scmp.lt.s32.totalorder %s1100_s27, %s935_s16 }
  0x23   : > { %p932_p1 = pnand %p930_p13, %p916_p0  ;;  %p938_p3 = scmp.lt.s32.totalorder %s936_s20, %s929_s13 }
  0x25   : > { %p933_p11 = pneg %p932_p1  ;;  %p939_p4 = por %p938_p3, %p937_p10 }
  0x27   : > { %p940_p5 = pnand %p939_p4, %p933_p11 }
  0x29   : > { %943 = shalt.err (!%p940_p5)
}
  0x2a   : > { %s1013_s21 = smov 128   ;;  %s1014_s22 = smov 8  }
  0x2b   : > { %835 = dma.hbm_to_vmem [thread:$0]  (!%p1096_p12), %s1092_s25, 256, %s1100_s27, %s1102_s29, %s1013_s21, %s1013_s21, %s1014_s22  }
  0x2c   : > { %p742_p0 = scmp.ge.s32.totalorder %s1010_s9, 1  ;;  %p106_p2 = scmp.lt.s32.totalorder %s1010_s9, 5 }
  0x2e   : > { %p107_p7 = pnand %p742_p0, %p106_p2 }
  0x2f   : > { %s1133_s23 = sand.u32 (!%p107_p7), 1, %s1002_s7  }
  0x30   : > { %110 = sbr.rel (%p107_p7) target bundleno = 2445 (0x98d), region = 24  ;;  %s743_s24 = sshll.u32 (!%p107_p7), %s1133_s23, 4 }
  0x31   : > { %s113_s26 = scalar_lea.sflag (!%p107_p7), [#allocation3], %s1133_s23  ;;  %s116_s30 = scalar_lea.vmem (!%p107_p7), [#allocation2], %s743_s24 }
  0x37   : > { %989 = dma.done.wait (%p1073_p6), %s113_s26, 256  }
  0x38   : > { %991 = vsyncadd (%p1073_p6), %s113_s26, 4294967040  ;;  %v137_v0 = vlaneseq  ;;  %vm143_vm0 = vcmask 261120   ;;  %v1015_v2 = vmov 0.35355338   ;;  %v135_v4 = vld [vmem:[%s116_s30] sm:$0xff]  ;;  %v136_v5 = vld [vmem:[%s116_s30 + $0x8] sm:$0xff] }
  0x39   : > { %vm1147_vm2 = vmpackc.low %vm143_vm0, %vm143_vm0  ;;  %v808_v7 = vpack.c.bf16 %v136_v5, %v135_v4  ;;  %vm231_vm3 = vcmask 130048   ;;  %v1016_v36 = vmov 0   ;;  %s134_s17 = scalar_lea.vmem [#allocation5], %s743_s24  ;;  %s763_s27 = sshll.u32 %s1051_s10, 8 }
  0x3a   : > { %v138_v1 = vand.u32 127, %v137_v0  ;;  %881 = vset.pattern.permute.xlu1 %v1016_v36  ;;  %880 = vset.pattern.permute.xlu0 %v1016_v36  ;;  %s663_s25 = sshll.u32 %s134_s17, 4  ;;  %s1196_s2 = scalar_lea.hbm %s1241_s1, %s763_s27  ;;  %s1190_s25 = int_to_ptr.vmem [resolvable:$true] %s663_s25 }
  0x3b   : > { %810 = vmatprep.subr.msk.bf16.mxu0 %vm1147_vm2, %v808_v7  ;;  %815 = vmatprep.subr.bf16.mxu1 %v808_v7  ;;  %s650_s3 = scalar_lea.sflag [#allocation4], %s1133_s23  ;;  %s944_s4 = scalar_lea.vmem %s1190_s25, 256 }
  0x3c   : > { %vm139_vm1 = vcmp.eq.s32.totalorder %v138_v1, 0  ;;  %813 = vmatpush3.bf16.xpose.msk.msra.mxu0 %vm1147_vm2, %v808_v7  ;;  %817 = vmatpush3.bf16.msra.mxu1 %v808_v7  ;;  %p945_p6 = scmp.ne.s32.totalorder %s1190_s25, %s944_s4  ;;  %p1250_p10 = scmp.ne.s32.totalorder %s1245_s18, 0 }
  0x3d   : > { %v1143_v3 = vsel %vm139_vm1, -0.35355338, %v1015_v2  ;;  %s1017_s10 = smov [#allocation5]  }
  0x3e   : > { %v141_v8 = vmul.f32 %v1143_v3, %v135_v4  ;;  %v142_v9 = vmul.f32 %v1143_v3, %v136_v5  ;;  %p946_p11 = pnand %p945_p6, %p1250_p10  ;;  %s948_s5 = sshll.u32 %s1017_s10, 4  ;;  %s949_s5 = int_to_ptr.vmem [resolvable:$false] %s948_s5 }
  0x3f   : > { %s950_s11 = scalar_lea.vmem %s949_s5, 512  ;;  %p951_p8 = scmp.lt.s32.totalorder %s1190_s25, %s949_s5 }
  0x40   : > { %784 = vmatprep.mubr.msk.f32.mxu0 %vm143_vm0, %v141_v8  ;;  %p947_p12 = pneg %p946_p11  ;;  %p952_p9 = scmp.lt.s32.totalorder %s950_s11, %s944_s4 }
  0x42   : > { %p953_p13 = por %p952_p9, %p951_p8 }
  0x43   : > { %785 = vmatmul.mubr.msk.f32.vlgmr.msra.gmra.mrb[0].mxu0 %vm143_vm0, %v142_v9 }
  0x44   : > { %p954_p1 = pnand %p953_p13, %p947_p12 }
 0x116   : > { %v786_v10 = vpop.f32.mrb[0].mxu0 }
 0x117   : > { %v222_v11 = vpop.f32.mrb[1].mxu0  ;;  %v235_v13 = vsel %vm231_vm3, %v786_v10, -inf }
 0x118   : > { %v232_v12 = vsel %vm231_vm3, %v222_v11, -inf }
 0x119   : > { %233 = vmax.xlane.f32.xlu0 %v232_v12 }
 0x11d   : > { %236 = vmax.xlane.f32.xlu0 %v235_v13 }
 0x1a6   : > { %v234_v14 = vpop.xlane.xlu0 %233 }
 0x1a7   : > { %v238_v15 = vsub.f32 %v222_v11, %v234_v14 }
 0x1a9   : > { %v240_v16 = vmul.f32 1.442695, %v238_v15 }
 0x1aa   : > { %v237_v17 = vpop.xlane.xlu0 %236 }
 0x1ab   : > { %882 = vpow2.f32 %v240_v16  ;;  %v239_v18 = vsub.f32 %v786_v10, %v237_v17 }
 0x1ad   : > { %v242_v19 = vmul.f32 1.442695, %v239_v18 }
 0x1af   : > { %884 = vpow2.f32 %v242_v19 }
 0x1b5   : > { %v883_v20 = vpop.eup %882 }
 0x1b6   : > { %791 = vmatprep.mubr.msk.f32.mxu1 %vm231_vm3, %v883_v20  ;;  %v244_v21 = vsel %vm231_vm3, %v883_v20, 0.0 }
 0x1b7   : > { %245 = vadd.xlane.f32.xlu1 %v244_v21 }
 0x1b9   : > { %v885_v22 = vpop.eup %884 }
 0x1ba   : > { %792 = vmatmul.mubr.msk.f32.vlgmr.msra.gmra.mrb[0].mxu1 %vm231_vm3, %v885_v22  ;;  %v247_v23 = vsel %vm231_vm3, %v885_v22, 0.0 }
 0x1bb   : > { %248 = vadd.xlane.f32.xlu1 %v247_v23 }
 0x244   : > { %v246_v24 = vpop.xlane.xlu1 %245 }
 0x248   : > { %v249_v25 = vpop.xlane.xlu1 %248 }
 0x249   : > { %886 = vrcp.f32 %v249_v25 }
 0x24a   : > { %888 = vrcp.f32 %v246_v24 }
 0x253   : > { %v887_v26 = vpop.eup %886 }
 0x254   : > { %v889_v28 = vpop.eup %888 }
 0x28d   : > { %v793_v27 = vpop.f32.mrb[0].mxu1 }
 0x28e   : > { %v334_v29 = vmul.f32 %v887_v26, %v793_v27  ;;  %v322_v30 = vpop.f32.mrb[1].mxu1 }
 0x28f   : > { %v333_v31 = vmul.f32 %v889_v28, %v322_v30 }
 0x290   : > { %v336_v32 = vmul.f32 %v334_v29, %v334_v29 }
 0x291   : > { %v335_v33 = vmul.f32 %v333_v31, %v333_v31 }
 0x292   : > { %v340_v34 = vsel %vm143_vm0, %v336_v32, 0.0  ;;  %v344_v37 = vmul.f32 2.0, %v336_v32 }
 0x293   : > { %341 = vadd.xlane.f32.xlu1 %v340_v34  ;;  %v337_v35 = vsel %vm143_vm0, %v335_v33, 0.0  ;;  %v343_v39 = vmul.f32 2.0, %v335_v33 }
 0x294   : > { %338 = vadd.xlane.f32.xlu0 %v337_v35 }
 0x320   : > { %v342_v38 = vpop.xlane.xlu1 %341 }
 0x321   : > { %v346_v40 = vsub.f32 %v344_v37, %v342_v38  ;;  %v339_v41 = vpop.xlane.xlu0 %338 }
 0x322   : > { %v345_v42 = vsub.f32 %v343_v39, %v339_v41 }
 0x323   : > { %v348_v43 = vand.u32 2147483647, %v346_v40 }
 0x324   : > { %v347_v44 = vand.u32 2147483647, %v345_v42 }
 0x325   : > { %v350_v45 = vmax.f32 %v348_v43, 1e-08 }
 0x326   : > { %v349_v46 = vmax.f32 %v347_v44, 1e-08 }
 0x327   : > { %890 = vrsqrt.f32 %v350_v45 }
 0x328   : > { %892 = vrsqrt.f32 %v349_v46 }
 0x331   : > { %v891_v47 = vpop.eup %890 }
 0x332   : > { %v893_v48 = vpop.eup %892  ;;  %360 = vperm.xlu1 %881, %v891_v47  }
 0x333   : > { %355 = vperm.xlu0 %880, %v893_v48  }
 0x3b1   : > { %v361_v49 = vpop.permute.xlu1 %360 }
 0x3b2   : > { %v364_v50 = vmul.f32 %v361_v49, %v334_v29  ;;  %v356_v51 = vpop.permute.xlu0 %355 }
 0x3b3   : > { %v363_v52 = vmul.f32 %v356_v51, %v333_v31 }
 0x3b4   : > { %v366_v53 = vmul.f32 %v364_v50, %v364_v50 }
 0x3b5   : > { %v365_v54 = vmul.f32 %v363_v52, %v363_v52 }
 0x3b6   : > { %v370_v55 = vsel %vm143_vm0, %v366_v53, 0.0  ;;  %v374_v57 = vmul.f32 2.0, %v366_v53 }
 0x3b7   : > { %371 = vadd.xlane.f32.xlu0 %v370_v55  ;;  %v367_v56 = vsel %vm143_vm0, %v365_v54, 0.0  ;;  %v373_v59 = vmul.f32 2.0, %v365_v54 }
 0x3b8   : > { %368 = vadd.xlane.f32.xlu1 %v367_v56 }
 0x444   : > { %v372_v58 = vpop.xlane.xlu0 %371 }
 0x445   : > { %v376_v60 = vsub.f32 %v374_v57, %v372_v58  ;;  %v369_v61 = vpop.xlane.xlu1 %368 }
 0x446   : > { %v375_v62 = vsub.f32 %v373_v59, %v369_v61 }
 0x447   : > { %v378_v63 = vand.u32 2147483647, %v376_v60 }
 0x448   : > { %v377_v0 = vand.u32 2147483647, %v375_v62 }
 0x449   : > { %v380_v2 = vmax.f32 %v378_v63, 1e-08 }
 0x44a   : > { %v379_v1 = vmax.f32 %v377_v0, 1e-08 }
 0x44c   : > { %894 = vrsqrt.f32 %v379_v1 }
 0x44d   : > { %896 = vrsqrt.f32 %v380_v2 }
 0x456   : > { %v895_v4 = vpop.eup %894 }
 0x457   : > { %385 = vperm.xlu1 %881, %v895_v4   ;;  %v897_v5 = vpop.eup %896 }
 0x45b   : > { %390 = vperm.xlu1 %881, %v897_v5  }
 0x4d6   : > { %v386_v7 = vpop.permute.xlu1 %385 }
 0x4d7   : > { %v393_v8 = vmul.f32 %v386_v7, %v363_v52 }
 0x4d9   : > { %v395_v9 = vmul.f32 %v393_v8, %v1143_v3 }
 0x4da   : > { %v391_v10 = vpop.permute.xlu1 %390 }
 0x4db   : > { %v394_v11 = vmul.f32 %v391_v10, %v364_v50  ;;  %798 = vmatprep.mubr.msk.f32.mxu1 %vm143_vm0, %v395_v9 }
 0x4dd   : > { %v818_v12 = vpack.c.bf16 %v394_v11, %v393_v8  ;;  %v396_v13 = vmul.f32 %v394_v11, %v1143_v3 }
 0x4df   : > { %820 = vmatprep.subr.msk.bf16.mxu1 %vm1147_vm2, %v818_v12  ;;  %825 = vmatprep.subr.bf16.mxu0 %v818_v12 }
 0x4e0   : > { %823 = vmatpush3.bf16.xpose.msk.msra.mxu1 %vm1147_vm2, %v818_v12  ;;  %827 = vmatpush3.bf16.msra.mxu0 %v818_v12 }
 0x4e7   : > { %799 = vmatmul.mubr.msk.f32.vlgmr.msra.gmra.mrb[2].mxu1 %vm143_vm0, %v396_v13 }
 0x5ba   : > { %v800_v14 = vpop.f32.mrb[2].mxu1 }
 0x5bb   : > { %v475_v15 = vpop.f32.mrb[3].mxu1  ;;  %v487_v16 = vsel %vm231_vm3, %v800_v14, -inf }
 0x5bc   : > { %488 = vmax.xlane.f32.xlu0 %v487_v16  ;;  %v484_v17 = vsel %vm231_vm3, %v475_v15, -inf }
 0x5bd   : > { %485 = vmax.xlane.f32.xlu1 %v484_v17 }
 0x649   : > { %v489_v18 = vpop.xlane.xlu0 %488 }
 0x64a   : > { %v491_v19 = vsub.f32 %v800_v14, %v489_v18  ;;  %v486_v20 = vpop.xlane.xlu1 %485 }
 0x64b   : > { %v490_v21 = vsub.f32 %v475_v15, %v486_v20 }
 0x64c   : > { %v494_v22 = vmul.f32 1.442695, %v491_v19 }
 0x64d   : > { %v492_v6 = vmul.f32 1.442695, %v490_v21 }
 0x64f   : > { %898 = vpow2.f32 %v492_v6 }
 0x650   : > { %900 = vpow2.f32 %v494_v22 }
 0x659   : > { %v899_v23 = vpop.eup %898 }
 0x65a   : > { %v901_v3 = vpop.eup %900  ;;  %805 = vmatprep.mubr.msk.f32.mxu0 %vm231_vm3, %v899_v23  ;;  %v496_v24 = vsel %vm231_vm3, %v899_v23, 0.0 }
 0x65b   : > { %806 = vmatmul.mubr.msk.f32.vlgmr.msra.gmra.mrb[2].mxu0 %vm231_vm3, %v901_v3  ;;  %497 = vadd.xlane.f32.xlu0 %v496_v24  ;;  %v499_v25 = vsel %vm231_vm3, %v901_v3, 0.0 }
 0x65f   : > { %500 = vadd.xlane.f32.xlu0 %v499_v25 }
 0x6e8   : > { %v498_v26 = vpop.xlane.xlu0 %497 }
 0x6e9   : > { %902 = vrcp.f32 %v498_v26 }
 0x6ec   : > { %v501_v27 = vpop.xlane.xlu0 %500 }
 0x6ed   : > { %904 = vrcp.f32 %v501_v27 }
 0x6f3   : > { %v903_v28 = vpop.eup %902 }
 0x6f7   : > { %v905_v30 = vpop.eup %904 }
 0x72e   : > { %v807_v29 = vpop.f32.mrb[2].mxu0 }
 0x72f   : > { %v574_v31 = vpop.f32.mrb[3].mxu0  ;;  %v586_v32 = vmul.f32 %v905_v30, %v807_v29 }
 0x730   : > { %v585_v33 = vmul.f32 %v903_v28, %v574_v31 }
 0x731   : > { %v588_v36 = vmul.f32 %v586_v32, %v586_v32 }
 0x732   : > { %v587_v34 = vmul.f32 %v585_v33, %v585_v33 }
 0x733   : > { %v592_v37 = vsel %vm143_vm0, %v588_v36, 0.0  ;;  %v596_v42 = vmul.f32 2.0, %v588_v36 }
 0x734   : > { %v589_v35 = vsel %vm143_vm0, %v587_v34, 0.0  ;;  %v595_v38 = vmul.f32 2.0, %v587_v34 }
 0x735   : > { %590 = vadd.xlane.f32.xlu0 %v589_v35 }
 0x739   : > { %593 = vadd.xlane.f32.xlu0 %v592_v37 }
 0x7c2   : > { %v591_v39 = vpop.xlane.xlu0 %590 }
 0x7c3   : > { %v597_v40 = vsub.f32 %v595_v38, %v591_v39 }
 0x7c5   : > { %v599_v41 = vand.u32 2147483647, %v597_v40 }
 0x7c6   : > { %v594_v43 = vpop.xlane.xlu0 %593 }
 0x7c7   : > { %v601_v44 = vmax.f32 %v599_v41, 1e-08  ;;  %v598_v45 = vsub.f32 %v596_v42, %v594_v43 }
 0x7c9   : > { %906 = vrsqrt.f32 %v601_v44  ;;  %v600_v46 = vand.u32 2147483647, %v598_v45 }
 0x7cb   : > { %v602_v47 = vmax.f32 %v600_v46, 1e-08 }
 0x7cd   : > { %908 = vrsqrt.f32 %v602_v47 }
 0x7d3   : > { %v907_v48 = vpop.eup %906 }
 0x7d4   : > { %607 = vperm.xlu0 %880, %v907_v48  }
 0x7d7   : > { %v909_v49 = vpop.eup %908 }
 0x7d8   : > { %612 = vperm.xlu1 %881, %v909_v49  }
 0x853   : > { %v608_v50 = vpop.permute.xlu0 %607 }
 0x854   : > { %v615_v51 = vmul.f32 %v608_v50, %v585_v33 }
 0x856   : > { %v617_v52 = vmul.f32 %v615_v51, %v615_v51 }
 0x857   : > { %v613_v53 = vpop.permute.xlu1 %612 }
 0x858   : > { %v616_v54 = vmul.f32 %v613_v53, %v586_v32  ;;  %v619_v55 = vsel %vm143_vm0, %v617_v52, 0.0  ;;  %v625_v58 = vmul.f32 2.0, %v617_v52 }
 0x859   : > { %620 = vadd.xlane.f32.xlu0 %v619_v55 }
 0x85a   : > { %v618_v56 = vmul.f32 %v616_v54, %v616_v54 }
 0x85c   : > { %v622_v57 = vsel %vm143_vm0, %v618_v56, 0.0  ;;  %v626_v62 = vmul.f32 2.0, %v618_v56 }
 0x85d   : > { %623 = vadd.xlane.f32.xlu1 %v622_v57 }
 0x8e6   : > { %v621_v59 = vpop.xlane.xlu0 %620 }
 0x8e7   : > { %v627_v60 = vsub.f32 %v625_v58, %v621_v59 }
 0x8e9   : > { %v629_v61 = vand.u32 2147483647, %v627_v60 }
 0x8ea   : > { %v624_v63 = vpop.xlane.xlu1 %623 }
 0x8eb   : > { %v631_v0 = vmax.f32 %v629_v61, 1e-08  ;;  %v628_v1 = vsub.f32 %v626_v62, %v624_v63 }
 0x8ed   : > { %910 = vrsqrt.f32 %v631_v0  ;;  %v630_v2 = vand.u32 2147483647, %v628_v1 }
 0x8ef   : > { %v632_v4 = vmax.f32 %v630_v2, 1e-08 }
 0x8f1   : > { %912 = vrsqrt.f32 %v632_v4 }
 0x8f7   : > { %v911_v5 = vpop.eup %910 }
 0x8f8   : > { %637 = vperm.xlu0 %880, %v911_v5  }
 0x8fb   : > { %v913_v7 = vpop.eup %912 }
 0x8fc   : > { %642 = vperm.xlu1 %881, %v913_v7  }
 0x977   : > { %v638_v8 = vpop.permute.xlu0 %637 }
 0x978   : > { %v645_v9 = vmul.f32 %v638_v8, %v615_v51 }
 0x97a   : > { %647 = vst.msk [vmem:[%s134_s17] sm:$0xff] %vm143_vm0, %v645_v9 }
 0x97b   : > { %v643_v10 = vpop.permute.xlu1 %642 }
 0x97c   : > { %v646_v11 = vmul.f32 %v643_v10, %v616_v54 }
 0x97e   : > { %648 = vst.msk [vmem:[%s134_s17 + $0x8] sm:$0xff] %vm143_vm0, %v646_v11 }
 0x97f   : > { %957 = shalt.err (!%p954_p1)
}
 0x980   : > { %s958_s13 = scalar_lea.hbm %s1196_s2, 256  ;;  %s962_s20 = scalar_lea.hbm %s1241_s1, 1024 }
 0x981   : > { %p959_p3 = scmp.ne.s32.totalorder %s1196_s2, %s958_s13  ;;  %p963_p0 = scmp.lt.u32.totalorder %s1196_s2, %s1241_s1 }
 0x982   : > { %p964_p2 = scmp.lt.u32.totalorder %s962_s20, %s958_s13  ;;  %p966_p6 = scmp.lt.u32.totalorder %s958_s13, %s1196_s2 }
 0x983   : > { %p960_p4 = pnand %p959_p3, %p1250_p10 }
 0x984   : > { %p965_p7 = por %p964_p2, %p963_p0 }
 0x985   : > { %p961_p5 = pneg %p960_p4 }
 0x986   : > { %p967_p11 = por %p966_p6, %p965_p7 }
 0x988   : > { %p968_p12 = pnand %p967_p11, %p961_p5 }
 0x98a   : > { %971 = shalt.err (!%p968_p12)
}
 0x98b   : > { %s1018_s24 = smov 128   ;;  %s1019_s26 = smov 8  }
 0x98c   : > { %830 = dma.vmem_to_hbm [thread:$0]  (%p1250_p10), %s1190_s25, 256, %s1196_s2, %s650_s3, %s1018_s24, %s1018_s24, %s1019_s26  }
 0x98d PF: > { %p841_p8 = scmp.ge.s32.totalorder %s1010_s9, 2  ;;  %s678_s30 = sand.u32 1, %s998_s6  }
 0x98e   : > { %p1251_p9 = scmp.ne.s32.totalorder %s1246_s19, 0  ;;  %s679_s17 = scalar_lea.sflag [#allocation4], %s678_s30 }
 0x990   : > { %p837_p13 = pnand %p841_p8, %p1251_p9 }
 0x992   : > { %993 = dma.done.wait (!%p837_p13), %s679_s17, 256  }
 0x993   : > { %995 = vsyncadd (!%p837_p13), %s679_s17, 4294967040  ;;  %p14_p1 = scmp.ge.s32.totalorder %s1055_s12, 6   ;;  %s1252_s6 = smov %s1002_s7 }
 0x994   : > { %s1253_s7 = smov %s1006_s8  ;;  %s1254_s8 = smov %s1067_s15 }
 0x995   : > { %s1255_s9 = smov %s1055_s12  ;;  %16 = sbr.rel (!%p14_p1) target bundleno = 5 (0x5), region = 69 }
 0x99c   :  { %684 = vsyncpa [#allocation3], 1 }
 0x99d   :  { %686 = vsyncpa [#allocation3 + $0x1], 1 }
 0x99e   :  { %687 = vsyncpa [#allocation4], 1 }
 0x99f   :  { %689 = vsyncpa [#allocation4 + $0x1], 1 }

</bundles_post_ra>
